<compile_context>
chip_gen: v6e
topology: v6e:2x2x1
jax: 0.10.0
libtpu: 0.0.40
codegen_flags: <defaults>
</compile_context>

<pallas_src>
import jax
import jax.numpy as jnp
from jax.experimental import pallas as pl
from jax.experimental.pallas import tpu as pltpu


def _linear_sigmoid_kernel(x_ref, w_ref, b_ref, o_ref):
    # x_ref: (TB, D) VMEM tile of the batch (double-buffered by the pipeline)
    # w_ref: (8, D)  VMEM, resident (8 identical sublane-broadcast copies of w)
    # b_ref: (1,)    SMEM scalar bias
    # o_ref: (1, TB) VMEM, lane-dense output slab
    x = x_ref[...]
    w = w_ref[...]
    # w @ x.T: contracting the feature dim of both operands puts the per-row
    # logits on the lane axis for free (no XLU transpose), so the epilogue and
    # the store are full lane width.  MXU consumes 8 sublanes per pass anyway,
    # so the 8 redundant weight rows cost nothing.
    z = jax.lax.dot_general(
        w, x, (((1,), (1,)), ((), ())), preferred_element_type=jnp.float32
    )                                    # (8, TB); all 8 rows identical
    z = z[0:1, :] + b_ref[0]             # (1, TB); scalar bias broadcast from SMEM
    # sigmoid: exp and approximate reciprocal both run on the EUP slot.
    o_ref[...] = pl.reciprocal(1.0 + jnp.exp(-z), approx=True).astype(o_ref.dtype)


def classification_model_forward(x, w, b, *, max_block_rows=1024):
    """Forward pass of ClassificationModel.

    x: [B, D] float32
    w: [1, D] float32  (PyTorch nn.Linear weight layout: [out_features, in_features])
    b: [1]    float32  (PyTorch nn.Linear bias)
    returns [B, 1] float32 = sigmoid(x @ w.T + b)
    """
    x = jnp.asarray(x, jnp.float32)
    B, D = x.shape
    w_row = jnp.asarray(w, jnp.float32).reshape(1, D)
    w8 = jnp.broadcast_to(w_row, (8, D))          # lane-dense, sublane-broadcast weight
    b1 = jnp.asarray(b, jnp.float32).reshape(1)   # scalar bias -> SMEM

    # ---- pick the batch tile TB ------------------------------------------------
    # Keep two in-flight (double-buffered) x tiles within ~16 MiB, i.e. half of
    # the 32 MiB scoped-VMEM budget requested below (safe on v5e/v6e/v7x).
    itemsize = 4
    rows_budget = (16 * 1024 * 1024) // max(2 * D * itemsize, 1)
    rows_budget = max(128, (rows_budget // 128) * 128)
    if B <= min(max_block_rows, rows_budget):
        TB = B                                     # single tile: block == full array
    else:
        TB = min(max_block_rows, rows_budget)
        TB = max(128, (TB // 128) * 128)           # lane-dense output tile: TB % 128 == 0

    num_tiles = pl.cdiv(B, TB)
    B_pad = num_tiles * TB
    if B_pad != B:
        x = jnp.pad(x, ((0, B_pad - B), (0, 0)))   # padded rows are sliced off below

    out_flat = pl.pallas_call(
        _linear_sigmoid_kernel,
        out_shape=jax.ShapeDtypeStruct((1, B_pad), jnp.float32),
        grid=(num_tiles,),
        in_specs=[
            pl.BlockSpec((TB, D), lambda i: (i, 0)),             # x tile (pipelined)
            pl.BlockSpec((8, D), lambda i: (0, 0)),              # weight (resident)
            pl.BlockSpec(memory_space=pltpu.MemorySpace.SMEM),   # bias scalar in SMEM
        ],
        out_specs=pl.BlockSpec((1, TB), lambda i: (0, i)),       # lane-dense output slab
        compiler_params=pltpu.CompilerParams(
            dimension_semantics=("parallel",),                   # megacore on v7x
            vmem_limit_bytes=32 * 1024 * 1024,
        ),
    )(x, w8, b1)

    # Layout plumbing back to the PyTorch-shaped [B, 1] output.
    return out_flat[0, :B].reshape(B, 1)


if __name__ == "__main__":
    # Small shapes consistent with the module: batch=8, input_size=32.
    B, D = 8, 32
    key = jax.random.PRNGKey(0)
    kx, kw, kb = jax.random.split(key, 3)

    x = jax.random.normal(kx, (B, D), dtype=jnp.float32)

    # Deterministic parameters mimicking PyTorch Linear's U(-1/sqrt(D), 1/sqrt(D)),
    # stored in PyTorch's native layouts: weight [1, D], bias [1].
    bound = 1.0 / jnp.sqrt(jnp.float32(D))
    w = jax.random.uniform(kw, (1, D), minval=-bound, maxval=bound, dtype=jnp.float32)
    b = jax.random.uniform(kb, (1,), minval=-bound, maxval=bound, dtype=jnp.float32)

    out = classification_model_forward(x, w, b)
    jax.block_until_ready(out)

    # Reference check in plain JAX (approx EUP reciprocal -> slightly loose tol).
    ref = jax.nn.sigmoid(x @ w.T + b)
    assert out.shape == (B, 1)
    assert jnp.allclose(out, ref, atol=2e-3, rtol=2e-3), "mismatch vs reference"

    print("KERNEL_OK")
</pallas_src>

<mosaic_0001>
module attributes {stable_mosaic.version = 11 : i64} {
  func.func @_linear_sigmoid_kernel(%arg0: i32, %arg1: memref<8x32xf32, #tpu.memory_space<vmem>>, %arg2: memref<8x32xf32, #tpu.memory_space<vmem>>, %arg3: memref<1xf32, #tpu.memory_space<smem>>, %arg4: memref<1x8xf32, #tpu.memory_space<vmem>>) attributes {dimension_semantics = [#tpu.dimension_semantics<parallel>], iteration_bounds = array<i64: 1>, scalar_prefetch = 0 : i64, scratch_operands = 0 : i64, tpu.core_type = #tpu.core_type<tc>, window_params = [{transform_indices = @transform_0, window_bounds = array<i64: 8, 32>}, {pipeline_mode = #tpu.pipeline_mode<synchronous>, transform_indices = @transform_1, window_bounds = array<i64: 8, 32>}, {transform_indices = @transform_2, window_bounds = array<i64: 1>}, {transform_indices = @transform_3, window_bounds = array<i64: 1, 8>}]} {
    %c0 = arith.constant 0 : index
    %c0_0 = arith.constant 0 : index
    %0 = vector.load %arg1[%c0, %c0_0] : memref<8x32xf32, #tpu.memory_space<vmem>>, vector<8x32xf32>
    %c0_1 = arith.constant 0 : index
    %c0_2 = arith.constant 0 : index
    %1 = vector.load %arg2[%c0_1, %c0_2] : memref<8x32xf32, #tpu.memory_space<vmem>>, vector<8x32xf32>
    %cst = arith.constant dense<0.000000e+00> : vector<8x8xf32>
    %2 = tpu.matmul %1, %0, %cst {dimension_numbers = #tpu.dot_dimension_numbers<[1], [1], [0], [0], [0, 0, 1, 0], [], []>} : vector<8x32xf32>, vector<8x32xf32>, vector<8x8xf32> -> vector<8x8xf32>
    %3 = vector.extract_strided_slice %2 {offsets = [0, 0], sizes = [1, 8], strides = [1, 1]} : vector<8x8xf32> to vector<1x8xf32>
    %c0_3 = arith.constant 0 : index
    %4 = memref.load %arg3[%c0_3] : memref<1xf32, #tpu.memory_space<smem>>
    %5 = vector.broadcast %4 : f32 to vector<1x8xf32>
    %6 = arith.addf %3, %5 : vector<1x8xf32>
    %cst_4 = arith.constant 0.000000e+00 : f32
    %7 = vector.broadcast %cst_4 : f32 to vector<1x8xf32>
    %8 = arith.subf %7, %6 : vector<1x8xf32>
    %9 = math.exp %8 : vector<1x8xf32>
    %cst_5 = arith.constant 1.000000e+00 : f32
    %10 = vector.broadcast %cst_5 : f32 to vector<1x8xf32>
    %11 = arith.addf %10, %9 : vector<1x8xf32>
    %12 = tpu.reciprocal %11 {approx = true} : vector<1x8xf32> -> vector<1x8xf32>
    %c0_6 = arith.constant 0 : index
    %c0_7 = arith.constant 0 : index
    %13 = vector.load %arg4[%c0_6, %c0_7] : memref<1x8xf32, #tpu.memory_space<vmem>>, vector<1x8xf32>
    tpu.vector_store %arg4[%c0_6, %c0_7], %12 {strides = array<i32>} : memref<1x8xf32, #tpu.memory_space<vmem>>, vector<1x8xf32>,
    return
  }
  func.func @transform_0(%arg0: i32) -> (i32, i32) {
    %c0_i32 = arith.constant 0 : i32
    %c0_i32_0 = arith.constant 0 : i32
    return %arg0, %c0_i32 : i32, i32
  }
  func.func @transform_1(%arg0: i32) -> (i32, i32) {
    %c0_i32 = arith.constant 0 : i32
    %c0_i32_0 = arith.constant 0 : i32
    %c0_i32_1 = arith.constant 0 : i32
    return %c0_i32, %c0_i32_0 : i32, i32
  }
  func.func @transform_2(%arg0: i32) -> i32 {
    %c0_i32 = arith.constant 0 : i32
    %c0_i32_0 = arith.constant 0 : i32
    return %c0_i32 : i32
  }
  func.func @transform_3(%arg0: i32) -> (i32, i32) {
    %c0_i32 = arith.constant 0 : i32
    %c0_i32_0 = arith.constant 0 : i32
    return %c0_i32, %arg0 : i32, i32
  }
}

</mosaic_0001>

<bundles_post_ra>
// kernel: tpu_custom_call.1
= control target key start
LH: loop header
LB: loop body
LE: loop exit
PB: predicated region body
PF: predicated region fallthrough
CT: control target
= control target key end

     0   :  { %9 = vsyncpa [#allocation4], 0  ;;  %s266_s0 = inlined_call_operand.hbm [shape: f32[8,32], index: 0, kind: input, shape index: {}]   ;;  %s267_s1 = inlined_call_operand.hbm [shape: f32[8,32], index: 1, kind: input, shape index: {}]   ;;  %s268_s2 = inlined_call_operand.<no memory space> [shape: f32[1], index: 2, kind: input, shape index: {}]   ;;  %s269_s3 = inlined_call_operand.hbm [shape: f32[1,8], index: 3, kind: output, shape index: {}]  }
   0x1   :  { %10 = vsyncpa [#allocation7], 0 }
   0x2   :  { %11 = vsyncpa [#allocation5], 0  ;;  %s229_s12 = smov [#allocation3]   ;;  %s230_s14 = smov [#allocation6]  }
   0x3   :  { %s18_s13 = sshll.u32 %s229_s12, 4  ;;  %s28_s15 = sshll.u32 %s230_s14, 4  ;;  %s19_s13 = int_to_ptr.vmem [resolvable:$true] %s18_s13  ;;  %s29_s15 = int_to_ptr.vmem [resolvable:$true] %s28_s15 }
   0x4   :  { %s171_s16 = scalar_lea.vmem %s19_s13, 128  ;;  %p176_p1 = scmp.lt.s32.totalorder %s19_s13, %s19_s13 }
   0x5   :  { %p172_p0 = scmp.ne.s32.totalorder %s19_s13, %s171_s16  ;;  %p177_p2 = scmp.lt.s32.totalorder %s171_s16, %s171_s16 }
   0x7   :  { %p178_p3 = por %p177_p2, %p176_p1 }
   0x9   :  { %p179_p4 = pnand %p178_p3, %p172_p0 }
   0xb   :  { %182 = shalt.err (!%p179_p4)
}
   0xc   :  { %21 = dma.hbm_to_vmem [thread:$0]  %s266_s0, 128, %s19_s13, [#allocation4]  }
   0xd   :  { %s191_s19 = scalar_lea.vmem %s29_s15, 128  ;;  %p196_p6 = scmp.lt.s32.totalorder %s29_s15, %s29_s15 }
   0xe   :  { %p192_p5 = scmp.ne.s32.totalorder %s29_s15, %s191_s19  ;;  %p197_p7 = scmp.lt.s32.totalorder %s191_s19, %s191_s19 }
  0x10   :  { %p198_p8 = por %p197_p7, %p196_p6 }
  0x12   :  { %p199_p9 = pnand %p198_p8, %p192_p5 }
  0x14   :  { %202 = shalt.err (!%p199_p9)
}
  0x15   :  { %31 = dma.hbm_to_vmem [thread:$0]  %s267_s1, 128, %s29_s15, [#allocation7]  }
  0x16   :  { %223 = dma.done.wait [#allocation4], 128  }
  0x17   :  { %224 = vsyncadd [#allocation4], 4294967168 }
  0x18   :  { %225 = dma.done.wait [#allocation7], 128  }
  0x19   :  { %226 = vsyncadd [#allocation7], 4294967168  ;;  %v231_v0 = vmov 0.0   ;;  %vm232_vm0 = vmmov 0   ;;  %vm42_vm1 = vcmask 261120   ;;  %v40_v1 = vld [vmem:[#allocation3] sm:$0xff]  ;;  %v120_v3 = vstv %s268_s2 }
  0x1a   :  { %149 = vmatprep.subr.mxu0 %v231_v0  ;;  %151 = vmatprep.mubr.msk.f32.mxu0 %vm232_vm0, %v231_v0  ;;  %v41_v2 = vld [vmem:[#allocation6] sm:$0xff]  ;;  %s233_s1 = smov [#allocation8]   ;;  %vm127_vm2 = vcmask 57344  }
  0x1b   :  { %150 = vmatpush3.xpose.msk.msra.mxu0 %vm42_vm1, %v40_v1  ;;  %s135_s23 = sshll.u32 %s233_s1, 4  ;;  %s136_s23 = int_to_ptr.vmem [resolvable:$true] %s135_s23 }
  0x1c   :  { %s203_s24 = scalar_lea.vmem %s136_s23, 16  ;;  %s207_s25 = scalar_lea.vmem %s136_s23, 32 }
  0x1d   :  { %p204_p10 = scmp.ne.s32.totalorder %s136_s23, %s203_s24  ;;  %p208_p11 = scmp.lt.s32.totalorder %s136_s23, %s136_s23 }
  0x1e   :  { %152 = vmatmul.mubr.msk.f32.vlgmr.msra.gmra.mxu0 %vm42_vm1, %v41_v2  ;;  %p209_p12 = scmp.lt.s32.totalorder %s207_s25, %s203_s24 }
  0x20   :  { %p210_p13 = por %p209_p12, %p208_p11 }
  0x22   :  { %p211_p0 = pnand %p210_p13, %p204_p10 }
  0xde   :  { %v115_v4 = vpop.f32.mrf.mxu0 }
  0xdf   :  { %v121_v5 = vadd.f32 %v120_v3, %v115_v4 }
  0xe0   :  { %v153_v6 = vpop.f32.mrf.mxu0 }
  0xe1   :  { %v122_v7 = vsub.f32 0.0, %v121_v5 }
  0xe3   :  { %v123_v8 = vmul.f32 1.442695, %v122_v7 }
  0xe5   :  { %159 = vpow2.f32 %v123_v8 }
  0xf2   :  { %v160_v9 = vpop.eup %159 }
  0xf3   :  { %v125_v10 = vadd.f32 1.0, %v160_v9 }
  0xf5   :  { %161 = vrcp.f32 %v125_v10 }
 0x102   :  { %v162_v11 = vpop.eup %161 }
 0x103   :  { %128 = vst.msk [vmem:[#allocation8] sm:$0x1] %vm127_vm2, %v162_v11 }
 0x104   :  { %214 = shalt.err (!%p211_p0)
}
 0x105   :  { %138 = dma.vmem_to_hbm [thread:$0]  %s136_s23, 16, %s269_s3, [#allocation5]  }
 0x106   :  { %227 = dma.done.wait [#allocation5], 16  }
 0x107   :  { %228 = vsyncadd [#allocation5], 4294967280 }
 0x108   :  { %142 = vsyncpa [#allocation4], 1 }
 0x109   :  { %143 = vsyncpa [#allocation7], 1 }
 0x10a   :  { %144 = vsyncpa [#allocation5], 1 }

</bundles_post_ra>
